<compile_context>
chip_gen: v7x
topology: tpu7x:2x2x1
jax: 0.10.0
libtpu: 0.0.40
codegen_flags: <defaults>
</compile_context>

<pallas_src>
import functools

import jax
import jax.numpy as jnp
from jax.experimental import pallas as pl
from jax.experimental.pallas import tpu as pltpu


def _aet_linear_kernel(x_ref, w_ref, u_ref, b_ref, o_ref, acc_ref):
    k = pl.program_id(2)

    @pl.when(k == 0)
    def _init():
        # Seed the accumulator with the low-rank term (x @ a) @ b — once per
        # (i, j) output tile, in f32, instead of a plain zero-init.
        acc_ref[...] = jnp.dot(
            u_ref[...],
            b_ref[...].astype(jnp.float32),
            preferred_element_type=jnp.float32,
        )

    # Hot loop: one pure x @ w MXU matmul per grid step.
    acc_ref[...] += jnp.dot(
        x_ref[...], w_ref[...], preferred_element_type=jnp.float32
    )

    @pl.when(k == pl.num_programs(2) - 1)
    def _finalize():
        o_ref[...] = acc_ref[...].astype(o_ref.dtype)


def _round_up(n, m):
    return ((n + m - 1) // m) * m


def _pad_to(arr, shape):
    pads = [(0, t - s) for s, t in zip(arr.shape, shape)]
    if all(p == (0, 0) for p in pads):
        return arr
    return jnp.pad(arr, pads)


def _pick_tile(dim, requested, align):
    """Largest legal tile <= requested, preferring exact divisors (no pad)."""
    requested = max(align, (requested // align) * align)
    dim_p = _round_up(dim, align)
    if dim_p <= requested:
        return dim_p
    t = requested
    while t >= align:
        if dim % t == 0:
            return t  # divides exactly -> no jnp.pad copy of this operand
        t -= align
    return requested  # ragged: fall back to padding


@functools.partial(jax.jit, static_argnames=("tm", "tn", "tk"))
def aet_linear(x, w, a, b, *, tm=None, tn=None, tk=None):
    """Pallas TPU forward of AETLinear: x @ w + x @ a @ b."""
    batch, in_features = x.shape
    out_features = w.shape[1]
    rank = a.shape[1]
    assert w.shape == (in_features, out_features)
    assert a.shape == (in_features, rank)
    assert b.shape == (rank, out_features)

    x_isz = jnp.dtype(x.dtype).itemsize
    w_isz = jnp.dtype(w.dtype).itemsize
    o_isz = x_isz

    # ---- Tile selection (generation-aware defaults, divisor-preferring). ----
    req_tm = 512 if tm is None else tm
    req_tn = 512 if tn is None else tn
    req_tk = (1024 if w_isz <= 2 else 512) if tk is None else tk

    tm = _pick_tile(batch, req_tm, 8)
    tn = _pick_tile(out_features, req_tn, 128)
    tk = _pick_tile(in_features, req_tk, 128)

    def _footprint(tm_, tn_, tk_):
        return (2 * tm_ * tk_ * x_isz          # x, double-buffered
                + 2 * tk_ * tn_ * w_isz        # w, double-buffered
                + 2 * tm_ * tn_ * o_isz        # out, double-buffered
                + tm_ * tn_ * 4                # f32 accumulator
                + 2 * tm_ * rank * 4           # u
                + 2 * rank * tn_ * w_isz)      # b

    # Small-batch (GEMV-like, memory-bound): prefer a single K step so the
    # weight stream is one long DMA and the accumulator is written once.
    if _round_up(batch, 8) <= 256:
        full_k = _round_up(in_features, 128)
        if full_k > tk and _footprint(tm, tn, full_k) <= 24 * 1024 * 1024:
            tk = full_k

    m_p = _round_up(batch, tm)
    k_p = _round_up(in_features, tk)
    n_p = _round_up(out_features, tn)

    # v7x dual-TC: make sure the parallel axes have >= 2 blocks when possible.
    if m_p // tm == 1 and n_p // tn == 1 and n_p % 256 == 0:
        tn = n_p // 2

    # Tiny low-rank precompute, kept in f32 until the final cast.
    u = jnp.dot(
        x.astype(jnp.float32), a.astype(jnp.float32),
        preferred_element_type=jnp.float32,
    )

    x_p = _pad_to(x, (m_p, k_p))
    w_p = _pad_to(w, (k_p, n_p))
    u_p = _pad_to(u, (m_p, rank))
    b_p = _pad_to(b, (rank, n_p))

    grid = (m_p // tm, n_p // tn, k_p // tk)

    vmem_limit = min(max(int(1.5 * _footprint(tm, tn, tk)), 32 * 1024 * 1024),
                     48 * 1024 * 1024)

    cost = pl.CostEstimate(
        flops=2 * m_p * n_p * k_p + 2 * m_p * n_p * rank,
        transcendentals=0,
        bytes_accessed=(m_p * k_p * x_isz + k_p * n_p * w_isz
                        + m_p * rank * 4 + rank * n_p * w_isz
                        + m_p * n_p * o_isz),
    )

    out = pl.pallas_call(
        _aet_linear_kernel,
        out_shape=jax.ShapeDtypeStruct((m_p, n_p), x.dtype),
        grid_spec=pltpu.PrefetchScalarGridSpec(
            num_scalar_prefetch=0,
            grid=grid,
            in_specs=[
                pl.BlockSpec((tm, tk), lambda i, j, k: (i, k)),     # x
                pl.BlockSpec((tk, tn), lambda i, j, k: (k, j)),     # w
                pl.BlockSpec((tm, rank), lambda i, j, k: (i, 0)),   # u = x @ a
                pl.BlockSpec((rank, tn), lambda i, j, k: (0, j)),   # b
            ],
            out_specs=pl.BlockSpec((tm, tn), lambda i, j, k: (i, j)),
            scratch_shapes=[pltpu.VMEM((tm, tn), jnp.float32)],
        ),
        compiler_params=pltpu.CompilerParams(
            dimension_semantics=("parallel", "parallel", "arbitrary"),
            vmem_limit_bytes=vmem_limit,
        ),
        cost_estimate=cost,
    )(x_p, w_p, u_p, b_p)

    return out[:batch, :out_features]


if __name__ == "__main__":
    key = jax.random.PRNGKey(0)
    keys = jax.random.split(key, 8)

    def _randf(k, shape):
        # Small integer-valued f32 inputs: every product / partial sum is
        # exactly representable regardless of MXU precision mode, so the
        # kernel (different summation order than the XLA reference) can be
        # checked with a tight tolerance.
        return jax.random.randint(k, shape, -3, 4).astype(jnp.float32)

    # --- Module-default toy shapes (batch=2, in=10, out=10, rank=1). ---
    batch, in_features, out_features, rank = 2, 10, 10, 1
    x = _randf(keys[0], (batch, in_features))
    w = _randf(keys[1], (in_features, out_features))
    a = _randf(keys[2], (in_features, rank))
    b = _randf(keys[3], (rank, out_features))

    out = jax.block_until_ready(aet_linear(x, w, a, b))
    ref = x @ w + x @ a @ b
    assert out.shape == (batch, out_features)
    assert jnp.allclose(out, ref, atol=1e-4, rtol=1e-4), float(
        jnp.max(jnp.abs(out - ref))
    )

    # --- MXU-scale shapes exercising the multi-tile (M, N, K) grid. ---
    batch2, in2, out2, rank2 = 512, 1024, 768, 4
    x2 = _randf(keys[4], (batch2, in2))
    w2 = _randf(keys[5], (in2, out2))
    a2 = _randf(keys[6], (in2, rank2))
    b2 = _randf(keys[7], (rank2, out2))

    out2_v = jax.block_until_ready(aet_linear(x2, w2, a2, b2))
    ref2 = x2 @ w2 + x2 @ a2 @ b2
    assert out2_v.shape == (batch2, out2)
    assert jnp.allclose(out2_v, ref2, atol=1e-3, rtol=1e-3), float(
        jnp.max(jnp.abs(out2_v - ref2))
    )

    print("KERNEL_OK")
</pallas_src>

<mosaic_0001>
module attributes {stable_mosaic.version = 11 : i64} {
  func.func @_aet_linear_kernel(%arg0: i32, %arg1: i32, %arg2: i32, %arg3: memref<8x128xf32, #tpu.memory_space<vmem>>, %arg4: memref<128x128xf32, #tpu.memory_space<vmem>>, %arg5: memref<8x1xf32, #tpu.memory_space<vmem>>, %arg6: memref<1x128xf32, #tpu.memory_space<vmem>>, %arg7: memref<8x128xf32, #tpu.memory_space<vmem>>, %arg8: memref<8x128xf32, #tpu.memory_space<vmem>>) attributes {dimension_semantics = [#tpu.dimension_semantics<parallel>, #tpu.dimension_semantics<parallel>, #tpu.dimension_semantics<arbitrary>], iteration_bounds = array<i64: 1, 1, 1>, scalar_prefetch = 0 : i64, scratch_operands = 1 : i64, tpu.core_type = #tpu.core_type<tc>, window_params = [{transform_indices = @transform_0, window_bounds = array<i64: 8, 128>}, {transform_indices = @transform_1, window_bounds = array<i64: 128, 128>}, {transform_indices = @transform_2, window_bounds = array<i64: 8, 1>}, {transform_indices = @transform_3, window_bounds = array<i64: 1, 128>}, {transform_indices = @transform_4, window_bounds = array<i64: 8, 128>}]} {
    %c0_i32 = arith.constant 0 : i32
    %0 = arith.cmpi eq, %arg2, %c0_i32 : i32
    %1 = arith.extui %0 : i1 to i32
    %c0_i32_0 = arith.constant 0 : i32
    %2 = arith.cmpi ne, %1, %c0_i32_0 : i32
    scf.if %2 {
      %c0_10 = arith.constant 0 : index
      %c0_11 = arith.constant 0 : index
      %12 = vector.load %arg5[%c0_10, %c0_11] : memref<8x1xf32, #tpu.memory_space<vmem>>, vector<8x1xf32>
      %c0_12 = arith.constant 0 : index
      %c0_13 = arith.constant 0 : index
      %13 = vector.load %arg6[%c0_12, %c0_13] : memref<1x128xf32, #tpu.memory_space<vmem>>, vector<1x128xf32>
      %cst_14 = arith.constant dense<0.000000e+00> : vector<8x128xf32>
      %14 = tpu.matmul %12, %13, %cst_14 {dimension_numbers = #tpu.dot_dimension_numbers<[1], [0], [0], [1], [0, 0, 1, 1], [], []>} : vector<8x1xf32>, vector<1x128xf32>, vector<8x128xf32> -> vector<8x128xf32>
      %c0_15 = arith.constant 0 : index
      %c0_16 = arith.constant 0 : index
      %15 = vector.load %arg8[%c0_15, %c0_16] : memref<8x128xf32, #tpu.memory_space<vmem>>, vector<8x128xf32>
      tpu.vector_store %arg8[%c0_15, %c0_16], %14 {strides = array<i32>} : memref<8x128xf32, #tpu.memory_space<vmem>>, vector<8x128xf32>,
    } else {
    }
    %c0 = arith.constant 0 : index
    %c0_1 = arith.constant 0 : index
    %3 = vector.load %arg8[%c0, %c0_1] : memref<8x128xf32, #tpu.memory_space<vmem>>, vector<8x128xf32>
    %c0_2 = arith.constant 0 : index
    %c0_3 = arith.constant 0 : index
    %4 = vector.load %arg3[%c0_2, %c0_3] : memref<8x128xf32, #tpu.memory_space<vmem>>, vector<8x128xf32>
    %c0_4 = arith.constant 0 : index
    %c0_5 = arith.constant 0 : index
    %5 = vector.load %arg4[%c0_4, %c0_5] : memref<128x128xf32, #tpu.memory_space<vmem>>, vector<128x128xf32>
    %cst = arith.constant dense<0.000000e+00> : vector<8x128xf32>
    %6 = tpu.matmul %4, %5, %cst {dimension_numbers = #tpu.dot_dimension_numbers<[1], [0], [0], [1], [0, 0, 1, 1], [], []>} : vector<8x128xf32>, vector<128x128xf32>, vector<8x128xf32> -> vector<8x128xf32>
    %7 = arith.addf %3, %6 : vector<8x128xf32>
    %c0_6 = arith.constant 0 : index
    %c0_7 = arith.constant 0 : index
    %8 = vector.load %arg8[%c0_6, %c0_7] : memref<8x128xf32, #tpu.memory_space<vmem>>, vector<8x128xf32>
    tpu.vector_store %arg8[%c0_6, %c0_7], %7 {strides = array<i32>} : memref<8x128xf32, #tpu.memory_space<vmem>>, vector<8x128xf32>,
    %c0_i32_8 = arith.constant 0 : i32
    %9 = arith.cmpi eq, %arg2, %c0_i32_8 : i32
    %10 = arith.extui %9 : i1 to i32
    %c0_i32_9 = arith.constant 0 : i32
    %11 = arith.cmpi ne, %10, %c0_i32_9 : i32
    scf.if %11 {
      %c0_10 = arith.constant 0 : index
      %c0_11 = arith.constant 0 : index
      %12 = vector.load %arg8[%c0_10, %c0_11] : memref<8x128xf32, #tpu.memory_space<vmem>>, vector<8x128xf32>
      %c0_12 = arith.constant 0 : index
      %c0_13 = arith.constant 0 : index
      %13 = vector.load %arg7[%c0_12, %c0_13] : memref<8x128xf32, #tpu.memory_space<vmem>>, vector<8x128xf32>
      tpu.vector_store %arg7[%c0_12, %c0_13], %12 {strides = array<i32>} : memref<8x128xf32, #tpu.memory_space<vmem>>, vector<8x128xf32>,
    } else {
    }
    return
  }
  func.func @transform_0(%arg0: i32, %arg1: i32, %arg2: i32) -> (i32, i32) {
    %c0_i32 = arith.constant 0 : i32
    return %arg0, %arg2 : i32, i32
  }
  func.func @transform_1(%arg0: i32, %arg1: i32, %arg2: i32) -> (i32, i32) {
    %c0_i32 = arith.constant 0 : i32
    return %arg2, %arg1 : i32, i32
  }
  func.func @transform_2(%arg0: i32, %arg1: i32, %arg2: i32) -> (i32, i32) {
    %c0_i32 = arith.constant 0 : i32
    %c0_i32_0 = arith.constant 0 : i32
    return %arg0, %c0_i32 : i32, i32
  }
  func.func @transform_3(%arg0: i32, %arg1: i32, %arg2: i32) -> (i32, i32) {
    %c0_i32 = arith.constant 0 : i32
    %c0_i32_0 = arith.constant 0 : i32
    return %c0_i32, %arg1 : i32, i32
  }
  func.func @transform_4(%arg0: i32, %arg1: i32, %arg2: i32) -> (i32, i32) {
    %c0_i32 = arith.constant 0 : i32
    return %arg0, %arg1 : i32, i32
  }
}

</mosaic_0001>

<bundles_post_ra>
// kernel: aet_linear.1
= control target key start
LH: loop header
LB: loop body
LE: loop exit
PB: predicated region body
PF: predicated region fallthrough
CT: control target
= control target key end

     0   :  { %v290_v0 = vmov 0.0|0.0   ;;  %v291_v4 = vmov 0.0   ;;  %vm292_vm0 = vmmov 0   ;;  %vm27_vm1 = vcmask 1040384   ;;  %s378_s1 = inlined_call_operand.vmem [shape: f32[128,128], index: 1, kind: input, shape index: {}]   ;;  %s379_s3 = inlined_call_operand.vmem [shape: f32[1,128], index: 3, kind: input, shape index: {}]   ;;  %s380_s2 = inlined_call_operand.vmem [shape: f32[8,1], index: 2, kind: input, shape index: {}]   ;;  %s381_s0 = inlined_call_operand.vmem [shape: f32[8,128], index: 0, kind: input, shape index: {}]   ;;  %s382_s4 = inlined_call_operand.vmem [shape: f32[8,128], index: 4, kind: output, shape index: {}]  }
   0x1   :  { %262 = vmatprep.subr.bf16.mxu0 %v290_v0  ;;  %v104_v1 = vld [vmem:[%s378_s1] sm:$0xff]  ;;  %v105_v2 = vld [vmem:[%s378_s1 + $0x8] sm:$0xff]  ;;  %v106_v3 = vld [vmem:[%s378_s1 + $0x10] sm:$0xff]  ;;  %222 = vmatprep.subr.mxu1 %v291_v4  ;;  %vm23_vm2 = vcmask 7168  }
   0x2   :  { %v263_v5 = vpack.c.bf16 %v105_v2, %v104_v1  ;;  %v107_v6 = vld [vmem:[%s378_s1 + $0x18] sm:$0xff]  ;;  %224 = vmatprep.mubr.msk.f32.mxu1 %vm292_vm0, %v291_v4  ;;  %259 = vmatprep.mubr.msk.f32.mxu0 %vm292_vm0, %v291_v4  ;;  %v108_v8 = vld [vmem:[%s378_s1 + $0x20] sm:$0xff]  ;;  %v109_v9 = vld [vmem:[%s378_s1 + $0x28] sm:$0xff] }
   0x3   :  { %v266_v7 = vpack.c.bf16 %v107_v6, %v106_v3  ;;  %v22_v10 = vld [vmem:[%s379_s3] sm:$0x1]  ;;  %v269_v12 = vpack.c.bf16 %v109_v9, %v108_v8  ;;  %v110_v13 = vld [vmem:[%s378_s1 + $0x30] sm:$0xff]  ;;  %v111_v14 = vld [vmem:[%s378_s1 + $0x38] sm:$0xff] }
   0x4   :  { %264 = vmatpush3.bf16.msra.mxu0 %v263_v5  ;;  %v21_v11 = vld [vmem:[%s380_s2] sm:$0xff]  ;;  %223 = vmatpush3.msk.msra.mxu1 %vm27_vm1, %v22_v10  ;;  %v272_v15 = vpack.c.bf16 %v111_v14, %v110_v13  ;;  %v113_v17 = vld [vmem:[%s378_s1 + $0x48] sm:$0xff]  ;;  %v114_v19 = vld [vmem:[%s378_s1 + $0x50] sm:$0xff] }
   0x5   :  { %265 = vmatprep.subr.bf16.mxu0 %v290_v0  ;;  %225 = vmatmul.mubr.msk.f32.vlgmr.msra.gmra.mrb[0].mxu1 %vm23_vm2, %v21_v11  ;;  %v112_v16 = vld [vmem:[%s378_s1 + $0x40] sm:$0xff]  ;;  %v115_v20 = vld [vmem:[%s378_s1 + $0x58] sm:$0xff]  ;;  %v117_v23 = vld [vmem:[%s378_s1 + $0x68] sm:$0xff] }
   0x6   :  { %v275_v18 = vpack.c.bf16 %v113_v17, %v112_v16  ;;  %v278_v21 = vpack.c.bf16 %v115_v20, %v114_v19  ;;  %v116_v22 = vld [vmem:[%s378_s1 + $0x60] sm:$0xff]  ;;  %v118_v25 = vld [vmem:[%s378_s1 + $0x70] sm:$0xff]  ;;  %v119_v26 = vld [vmem:[%s378_s1 + $0x78] sm:$0xff] }
   0x7   :  { %v281_v24 = vpack.c.bf16 %v117_v23, %v116_v22  ;;  %v284_v27 = vpack.c.bf16 %v119_v26, %v118_v25  ;;  %v103_v28 = vld [vmem:[%s381_s0] sm:$0xff] }
   0x8   :  { %267 = vmatpush3.bf16.msra.mxu0 %v266_v7 }
   0x9   :  { %268 = vmatprep.subr.bf16.mxu0 %v290_v0 }
   0xc   :  { %270 = vmatpush3.bf16.msra.mxu0 %v269_v12 }
   0xd   :  { %271 = vmatprep.subr.bf16.mxu0 %v290_v0 }
  0x10   :  { %273 = vmatpush3.bf16.msra.mxu0 %v272_v15 }
  0x11   :  { %274 = vmatprep.subr.bf16.mxu0 %v290_v0 }
  0x14   :  { %276 = vmatpush3.bf16.msra.mxu0 %v275_v18 }
  0x15   :  { %277 = vmatprep.subr.bf16.mxu0 %v290_v0 }
  0x18   :  { %279 = vmatpush3.bf16.msra.mxu0 %v278_v21 }
  0x19   :  { %280 = vmatprep.subr.bf16.mxu0 %v290_v0 }
  0x1c   :  { %282 = vmatpush3.bf16.msra.mxu0 %v281_v24 }
  0x1d   :  { %283 = vmatprep.subr.bf16.mxu0 %v290_v0 }
  0x20   :  { %285 = vmatpush3.bf16.msra.mxu0 %v284_v27 }
  0x23   :  { %260 = vmatmul.mubr.f32.vlgmr.msra.gmra.mrb[0].mxu0 %v103_v28 }
  0xd8   :  { %v97_v29 = vpop.f32.mrb[0].mxu1 }
  0xd9   :  { %v226_v30 = vpop.f32.mrb[1].mxu1 }
  0xf6   :  { %v186_v31 = vpop.f32.mrb[0].mxu0 }
  0xf7   :  { %v190_v32 = vadd.f32 %v186_v31, %v97_v29  ;;  %v261_v33 = vpop.f32.mrb[1].mxu0 }
  0xf9   :  { %196 = vst [vmem:[%s382_s4] sm:$0xff] %v190_v32 }

</bundles_post_ra>
